<compile_context>
chip_gen: v6e
topology: v6e:2x2x1
jax: 0.10.0
libtpu: 0.0.40
codegen_flags: <defaults>
</compile_context>

<pallas_src>
import functools

import jax
import jax.numpy as jnp
import numpy as np
from jax.experimental import pallas as pl
from jax.experimental.pallas import tpu as pltpu


# ------------------------------ tile utilities -------------------------------
def _pick_tile(dim, target, align):
    """Largest t <= target with t % align == 0 and dim % t == 0, else dim (full)."""
    if dim <= target:
        return dim
    t = (target // align) * align
    while t >= align:
        if dim % t == 0:
            return t
        t -= align
    return dim


# ----------------------------- RMSNorm kernels -------------------------------
def _rmsnorm_kernel(x_ref, w_ref, o_ref, *, eps):
    x = x_ref[...].astype(jnp.float32)
    var = jnp.mean(x * x, axis=-1, keepdims=True)
    xn = x * jax.lax.rsqrt(var + eps)
    o_ref[...] = (xn * w_ref[...].astype(jnp.float32)).astype(o_ref.dtype)


def rmsnorm(x, w, eps, *, tm_target=512):
    t, h = x.shape
    tm = _pick_tile(t, tm_target, 8)
    w2 = w.reshape(1, h)
    return pl.pallas_call(
        functools.partial(_rmsnorm_kernel, eps=eps),
        out_shape=jax.ShapeDtypeStruct(x.shape, x.dtype),
        grid=(t // tm,),
        in_specs=[
            pl.BlockSpec((tm, h), lambda i: (i, 0)),
            pl.BlockSpec((1, h), lambda i: (0, 0)),
        ],
        out_specs=pl.BlockSpec((tm, h), lambda i: (i, 0)),
        compiler_params=pltpu.CompilerParams(dimension_semantics=("parallel",)),
    )(x, w2)


def _add_rmsnorm_kernel(x_ref, r_ref, w_ref, o_ref, nr_ref, *, eps):
    x = x_ref[...].astype(jnp.float32) + r_ref[...].astype(jnp.float32)
    nr_ref[...] = x.astype(nr_ref.dtype)
    var = jnp.mean(x * x, axis=-1, keepdims=True)
    o_ref[...] = (
        x * jax.lax.rsqrt(var + eps) * w_ref[...].astype(jnp.float32)
    ).astype(o_ref.dtype)


def add_rmsnorm(x, residual, w, eps, *, tm_target=512):
    t, h = x.shape
    tm = _pick_tile(t, tm_target, 8)
    w2 = w.reshape(1, h)
    return pl.pallas_call(
        functools.partial(_add_rmsnorm_kernel, eps=eps),
        out_shape=(
            jax.ShapeDtypeStruct(x.shape, x.dtype),
            jax.ShapeDtypeStruct(x.shape, x.dtype),
        ),
        grid=(t // tm,),
        in_specs=[
            pl.BlockSpec((tm, h), lambda i: (i, 0)),
            pl.BlockSpec((tm, h), lambda i: (i, 0)),
            pl.BlockSpec((1, h), lambda i: (0, 0)),
        ],
        out_specs=(
            pl.BlockSpec((tm, h), lambda i: (i, 0)),
            pl.BlockSpec((tm, h), lambda i: (i, 0)),
        ),
        compiler_params=pltpu.CompilerParams(dimension_semantics=("parallel",)),
    )(x, residual, w2)


# ------------------------- Tiled K-accumulating matmul ------------------------
def _matmul_kernel(x_ref, w_ref, o_ref, acc_ref):
    @pl.when(pl.program_id(2) == 0)
    def _():
        acc_ref[...] = jnp.zeros_like(acc_ref)

    acc_ref[...] += jnp.dot(
        x_ref[...], w_ref[...], preferred_element_type=jnp.float32
    )

    @pl.when(pl.program_id(2) == pl.num_programs(2) - 1)
    def _():
        o_ref[...] = acc_ref[...].astype(o_ref.dtype)


def linear(x, w, *, tm_target=256, tn_target=512, tk_target=512):
    m, k = x.shape
    k2, n = w.shape
    assert k == k2
    tm = _pick_tile(m, tm_target, 8)
    tn = _pick_tile(n, tn_target, 128)
    tk = _pick_tile(k, tk_target, 128)
    grid = (m // tm, n // tn, k // tk)
    return pl.pallas_call(
        _matmul_kernel,
        out_shape=jax.ShapeDtypeStruct((m, n), x.dtype),
        grid=grid,
        in_specs=[
            pl.BlockSpec((tm, tk), lambda i, j, kk: (i, kk)),
            pl.BlockSpec((tk, tn), lambda i, j, kk: (kk, j)),
        ],
        out_specs=pl.BlockSpec((tm, tn), lambda i, j, kk: (i, j)),
        scratch_shapes=[pltpu.VMEM((tm, tn), jnp.float32)],
        compiler_params=pltpu.CompilerParams(
            dimension_semantics=("parallel", "parallel", "arbitrary")
        ),
    )(x, w)


# ------------------ Fused gate_up matmul + SiluAndMul epilogue ----------------
def _gate_up_silu_kernel(x_ref, wg_ref, wu_ref, o_ref, accg_ref, accu_ref):
    kk = pl.program_id(2)

    @pl.when(kk == 0)
    def _():
        accg_ref[...] = jnp.zeros_like(accg_ref)
        accu_ref[...] = jnp.zeros_like(accu_ref)

    x = x_ref[...]
    accg_ref[...] += jnp.dot(x, wg_ref[...], preferred_element_type=jnp.float32)
    accu_ref[...] += jnp.dot(x, wu_ref[...], preferred_element_type=jnp.float32)

    @pl.when(kk == pl.num_programs(2) - 1)
    def _():
        g = accg_ref[...]
        o_ref[...] = (g * jax.lax.logistic(g) * accu_ref[...]).astype(o_ref.dtype)


def gate_up_silu(x, w_gate_up, *, tm_target=256, tn_target=512, tk_target=512):
    """Computes silu(x @ W_gate) * (x @ W_up) with W_gate_up = concat([Wg, Wu], axis=1).

    Never materializes the (T, 2I) gate_up activation in HBM.
    """
    m, k = x.shape
    k2, n2 = w_gate_up.shape
    assert k == k2
    n = n2 // 2  # intermediate size
    tm = _pick_tile(m, tm_target, 8)
    tn = _pick_tile(n, tn_target, 128)
    tk = _pick_tile(k, tk_target, 128)
    up_off = n // tn  # block-index offset of the "up" half of the merged weight
    grid = (m // tm, n // tn, k // tk)
    return pl.pallas_call(
        _gate_up_silu_kernel,
        out_shape=jax.ShapeDtypeStruct((m, n), x.dtype),
        grid=grid,
        in_specs=[
            pl.BlockSpec((tm, tk), lambda i, j, kk: (i, kk)),
            pl.BlockSpec((tk, tn), lambda i, j, kk: (kk, j)),
            pl.BlockSpec((tk, tn), lambda i, j, kk: (kk, j + up_off)),
        ],
        out_specs=pl.BlockSpec((tm, tn), lambda i, j, kk: (i, j)),
        scratch_shapes=[
            pltpu.VMEM((tm, tn), jnp.float32),
            pltpu.VMEM((tm, tn), jnp.float32),
        ],
        compiler_params=pltpu.CompilerParams(
            dimension_semantics=("parallel", "parallel", "arbitrary")
        ),
    )(x, w_gate_up, w_gate_up)


# --------------------------------- RoPE (neox) --------------------------------
def _rope_kernel(x_ref, cos_ref, sin_ref, o_ref):
    x = x_ref[...].astype(jnp.float32)  # (1, tq, hd)
    hd = x.shape[-1]
    half = hd // 2
    x1 = x[..., :half]
    x2 = x[..., half:]
    cos = cos_ref[...][None].astype(jnp.float32)  # (1, tq, hd//2)
    sin = sin_ref[...][None].astype(jnp.float32)
    # Two half-width stores instead of a lane concatenate.
    o_ref[..., :half] = (x1 * cos - x2 * sin).astype(o_ref.dtype)
    o_ref[..., half:] = (x2 * cos + x1 * sin).astype(o_ref.dtype)


def apply_rope(x, cos, sin, *, tq_target=512):
    nh, t, hd = x.shape
    tq = _pick_tile(t, tq_target, 8)
    return pl.pallas_call(
        _rope_kernel,
        out_shape=jax.ShapeDtypeStruct(x.shape, x.dtype),
        grid=(t // tq, nh),  # head axis fastest so cos/sin blocks dedup across heads
        in_specs=[
            pl.BlockSpec((1, tq, hd), lambda qi, h: (h, qi, 0)),
            pl.BlockSpec((tq, hd // 2), lambda qi, h: (qi, 0)),
            pl.BlockSpec((tq, hd // 2), lambda qi, h: (qi, 0)),
        ],
        out_specs=pl.BlockSpec((1, tq, hd), lambda qi, h: (h, qi, 0)),
        compiler_params=pltpu.CompilerParams(
            dimension_semantics=("parallel", "parallel")
        ),
    )(x, cos, sin)


# ----------------------- Flash-style causal GQA attention ---------------------
_MASK_VALUE = -1e30


def _flash_attn_kernel(q_ref, k_ref, v_ref, o_ref, m_ref, l_ref, acc_ref,
                       *, scale, tq, tk):
    ki = pl.program_id(2)
    q_start = pl.program_id(1) * tq
    k_start = ki * tk

    @pl.when(ki == 0)
    def _():
        m_ref[...] = jnp.full_like(m_ref, _MASK_VALUE)
        l_ref[...] = jnp.zeros_like(l_ref)
        acc_ref[...] = jnp.zeros_like(acc_ref)

    # Skip kv tiles that are entirely above the causal diagonal for this q tile.
    @pl.when(k_start <= q_start + (tq - 1))
    def _():
        group = q_ref.shape[1]
        hd = q_ref.shape[3]
        q = q_ref[0].reshape(group * tq, hd).astype(jnp.float32)
        kk = k_ref[0].astype(jnp.float32)                       # (tk, hd)
        s = jnp.dot(q, kk.T, preferred_element_type=jnp.float32) * scale  # (g*tq, tk)

        rows = jax.lax.broadcasted_iota(jnp.int32, s.shape, 0)
        cols = jax.lax.broadcasted_iota(jnp.int32, s.shape, 1)
        qpos = q_start + rows % tq
        kpos = k_start + cols
        s = jnp.where(kpos <= qpos, s, _MASK_VALUE)

        m_prev = m_ref[...]
        m_new = jnp.maximum(m_prev, jnp.max(s, axis=-1, keepdims=True))
        alpha = jnp.exp(m_prev - m_new)
        p = jnp.exp(s - m_new)
        l_ref[...] = alpha * l_ref[...] + jnp.sum(p, axis=-1, keepdims=True)
        acc_ref[...] = alpha * acc_ref[...] + jnp.dot(
            p.astype(v_ref.dtype), v_ref[0], preferred_element_type=jnp.float32
        )
        m_ref[...] = m_new

    @pl.when(ki == pl.num_programs(2) - 1)
    def _():
        group = o_ref.shape[1]
        hd = o_ref.shape[3]
        out = acc_ref[...] * pl.reciprocal(l_ref[...], approx=True)
        o_ref[0] = out.reshape(group, tq, hd).astype(o_ref.dtype)


def flash_gqa_attention(q, k, v, scale, *, tq_target=256, tk_target=256):
    """q: (nkv, group, T, hd); k,v: (nkv, T, hd) -> (nkv, group, T, hd)."""
    nkv, group, t, hd = q.shape
    tq = _pick_tile(t, tq_target, 8)
    tk = _pick_tile(t, tk_target, 8)
    grid = (nkv, t // tq, t // tk)
    kernel = functools.partial(_flash_attn_kernel, scale=scale, tq=tq, tk=tk)
    return pl.pallas_call(
        kernel,
        out_shape=jax.ShapeDtypeStruct((nkv, group, t, hd), q.dtype),
        grid=grid,
        in_specs=[
            pl.BlockSpec((1, group, tq, hd), lambda h, qi, ki: (h, 0, qi, 0)),
            pl.BlockSpec((1, tk, hd), lambda h, qi, ki: (h, ki, 0)),
            pl.BlockSpec((1, tk, hd), lambda h, qi, ki: (h, ki, 0)),
        ],
        out_specs=pl.BlockSpec((1, group, tq, hd), lambda h, qi, ki: (h, 0, qi, 0)),
        scratch_shapes=[
            pltpu.VMEM((group * tq, 1), jnp.float32),   # running max
            pltpu.VMEM((group * tq, 1), jnp.float32),   # running sum
            pltpu.VMEM((group * tq, hd), jnp.float32),  # output accumulator
        ],
        compiler_params=pltpu.CompilerParams(
            dimension_semantics=("parallel", "parallel", "arbitrary")
        ),
    )(q, k, v)


# ----------------------------- Decoder layer glue -----------------------------
def rope_cos_sin(positions, head_dim, theta):
    inv_freq = 1.0 / (
        theta ** (jnp.arange(0, head_dim, 2, dtype=jnp.float32) / head_dim)
    )
    freqs = positions.astype(jnp.float32)[:, None] * inv_freq[None, :]
    return jnp.cos(freqs), jnp.sin(freqs)


def llama_decoder_layer(positions, hidden_states, params, cfg, residual=None):
    nh, nkv, hd = cfg["num_heads"], cfg["num_kv_heads"], cfg["head_dim"]
    eps, theta = cfg["rms_norm_eps"], cfg["rope_theta"]
    group = nh // nkv
    t = hidden_states.shape[0]
    q_size, kv_size = nh * hd, nkv * hd

    if residual is None:
        residual = hidden_states
        h = rmsnorm(hidden_states, params["input_ln"], eps)
    else:
        h, residual = add_rmsnorm(hidden_states, residual, params["input_ln"], eps)

    qkv = linear(h, params["w_qkv"])
    q = qkv[:, :q_size].reshape(t, nh, hd).transpose(1, 0, 2)               # (nh, T, hd)
    k = qkv[:, q_size:q_size + kv_size].reshape(t, nkv, hd).transpose(1, 0, 2)
    v = qkv[:, q_size + kv_size:].reshape(t, nkv, hd).transpose(1, 0, 2)

    cos, sin = rope_cos_sin(positions, hd, theta)
    q = apply_rope(q, cos, sin)
    k = apply_rope(k, cos, sin)

    qg = q.reshape(nkv, group, t, hd)
    attn = flash_gqa_attention(qg, k, v, hd ** -0.5)                        # (nkv, group, T, hd)
    attn = attn.reshape(nh, t, hd).transpose(1, 0, 2).reshape(t, q_size)
    o = linear(attn, params["w_o"])

    h, residual = add_rmsnorm(o, residual, params["post_ln"], eps)

    x = gate_up_silu(h, params["w_gate_up"])   # fused matmul + SiluAndMul
    out = linear(x, params["w_down"])
    return out, residual


# ------------------------------ Pure-JAX reference ----------------------------
def _rmsnorm_ref(x, w, eps):
    xf = x.astype(jnp.float32)
    var = jnp.mean(xf * xf, axis=-1, keepdims=True)
    return (xf * jax.lax.rsqrt(var + eps) * w).astype(x.dtype)


def reference_layer(positions, hidden_states, params, cfg, residual=None):
    nh, nkv, hd = cfg["num_heads"], cfg["num_kv_heads"], cfg["head_dim"]
    eps, theta = cfg["rms_norm_eps"], cfg["rope_theta"]
    t = hidden_states.shape[0]
    q_size, kv_size = nh * hd, nkv * hd

    if residual is None:
        residual = hidden_states
        h = _rmsnorm_ref(hidden_states, params["input_ln"], eps)
    else:
        residual = hidden_states + residual
        h = _rmsnorm_ref(residual, params["input_ln"], eps)

    qkv = h @ params["w_qkv"]
    q = qkv[:, :q_size].reshape(t, nh, hd).transpose(1, 0, 2)
    k = qkv[:, q_size:q_size + kv_size].reshape(t, nkv, hd).transpose(1, 0, 2)
    v = qkv[:, q_size + kv_size:].reshape(t, nkv, hd).transpose(1, 0, 2)

    cos, sin = rope_cos_sin(positions, hd, theta)

    def rope(x):
        x1, x2 = x[..., : hd // 2], x[..., hd // 2:]
        return jnp.concatenate(
            [x1 * cos[None] - x2 * sin[None], x2 * cos[None] + x1 * sin[None]], axis=-1
        )

    q, k = rope(q), rope(k)
    group = nh // nkv
    k_full = jnp.repeat(k, group, axis=0)
    v_full = jnp.repeat(v, group, axis=0)
    s = jnp.einsum("hqd,hkd->hqk", q, k_full) * (hd ** -0.5)
    mask = jnp.tril(jnp.ones((t, t), dtype=bool))
    s = jnp.where(mask[None], s, -jnp.inf)
    p = jax.nn.softmax(s, axis=-1)
    attn = jnp.einsum("hqk,hkd->hqd", p, v_full).transpose(1, 0, 2).reshape(t, q_size)
    o = attn @ params["w_o"]

    residual = o + residual
    h = _rmsnorm_ref(residual, params["post_ln"], eps)
    gu = h @ params["w_gate_up"]
    inter = gu.shape[-1] // 2
    x = jax.nn.silu(gu[:, :inter]) * gu[:, inter:]
    out = x @ params["w_down"]
    return out, residual


# ------------------------------------ Main ------------------------------------
def make_params(key, cfg, dtype=jnp.float32):
    H, nh, nkv, hd, I = (
        cfg["hidden_size"],
        cfg["num_heads"],
        cfg["num_kv_heads"],
        cfg["head_dim"],
        cfg["intermediate_size"],
    )
    q_size, kv_size = nh * hd, nkv * hd
    ks = jax.random.split(key, 6)

    def init(k, shape, scale):
        return (scale * jax.random.normal(k, shape)).astype(dtype)

    return {
        "input_ln": (1.0 + 0.01 * jax.random.normal(ks[0], (H,))).astype(dtype),
        "post_ln": (1.0 + 0.01 * jax.random.normal(ks[1], (H,))).astype(dtype),
        "w_qkv": init(ks[2], (H, q_size + 2 * kv_size), H ** -0.5),
        "w_o": init(ks[3], (q_size, H), q_size ** -0.5),
        "w_gate_up": init(ks[4], (H, 2 * I), H ** -0.5),
        "w_down": init(ks[5], (I, H), I ** -0.5),
    }


if __name__ == "__main__":
    cfg = dict(
        hidden_size=128,
        num_heads=4,
        num_kv_heads=2,
        head_dim=32,
        intermediate_size=256,
        rms_norm_eps=1e-6,
        rope_theta=10000.0,
    )
    T = 8

    key = jax.random.PRNGKey(0)
    k_param, k_x = jax.random.split(key)
    params = make_params(k_param, cfg)
    hidden_states = jax.random.normal(k_x, (T, cfg["hidden_size"]), dtype=jnp.float32)
    positions = jnp.arange(T, dtype=jnp.int32)

    out, residual = llama_decoder_layer(positions, hidden_states, params, cfg, None)
    out = jax.block_until_ready(out)
    residual = jax.block_until_ready(residual)

    ref_out, ref_res = reference_layer(positions, hidden_states, params, cfg, None)
    np.testing.assert_allclose(np.asarray(out), np.asarray(ref_out), atol=2e-2, rtol=2e-2)
    np.testing.assert_allclose(np.asarray(residual), np.asarray(ref_res), atol=2e-2, rtol=2e-2)

    print("KERNEL_OK")
</pallas_src>

<mosaic_0001>
module attributes {stable_mosaic.version = 11 : i64} {
  func.func @_rmsnorm_kernel(%arg0: i32, %arg1: memref<8x128xf32, #tpu.memory_space<vmem>>, %arg2: memref<1x128xf32, #tpu.memory_space<vmem>>, %arg3: memref<8x128xf32, #tpu.memory_space<vmem>>) attributes {dimension_semantics = [#tpu.dimension_semantics<parallel>], iteration_bounds = array<i64: 1>, scalar_prefetch = 0 : i64, scratch_operands = 0 : i64, tpu.core_type = #tpu.core_type<tc>, window_params = [{transform_indices = @transform_0, window_bounds = array<i64: 8, 128>}, {pipeline_mode = #tpu.pipeline_mode<synchronous>, transform_indices = @transform_1, window_bounds = array<i64: 1, 128>}, {transform_indices = @transform_2, window_bounds = array<i64: 8, 128>}]} {
    %c0 = arith.constant 0 : index
    %c0_0 = arith.constant 0 : index
    %0 = vector.load %arg1[%c0, %c0_0] : memref<8x128xf32, #tpu.memory_space<vmem>>, vector<8x128xf32>
    %1 = arith.mulf %0, %0 : vector<8x128xf32>
    %cst = arith.constant dense<0.000000e+00> : vector<8xf32>
    %2 = vector.multi_reduction <add>, %1, %cst [1] : vector<8x128xf32> to vector<8xf32>
    %3 = vector.shape_cast %2 : vector<8xf32> to vector<8x1xf32>
    %cst_1 = arith.constant 1.280000e+02 : f32
    %4 = vector.broadcast %cst_1 : f32 to vector<8x1xf32>
    %5 = arith.divf %3, %4 : vector<8x1xf32>
    %cst_2 = arith.constant 9.99999997E-7 : f32
    %6 = vector.broadcast %cst_2 : f32 to vector<8x1xf32>
    %7 = arith.addf %5, %6 : vector<8x1xf32>
    %8 = math.rsqrt %7 : vector<8x1xf32>
    %9 = vector.broadcast %8 : vector<8x1xf32> to vector<8x128xf32>
    %10 = arith.mulf %0, %9 : vector<8x128xf32>
    %c0_3 = arith.constant 0 : index
    %c0_4 = arith.constant 0 : index
    %11 = vector.load %arg2[%c0_3, %c0_4] : memref<1x128xf32, #tpu.memory_space<vmem>>, vector<1x128xf32>
    %12 = vector.broadcast %11 : vector<1x128xf32> to vector<8x128xf32>
    %13 = arith.mulf %10, %12 : vector<8x128xf32>
    %c0_5 = arith.constant 0 : index
    %c0_6 = arith.constant 0 : index
    %14 = vector.load %arg3[%c0_5, %c0_6] : memref<8x128xf32, #tpu.memory_space<vmem>>, vector<8x128xf32>
    tpu.vector_store %arg3[%c0_5, %c0_6], %13 {strides = array<i32>} : memref<8x128xf32, #tpu.memory_space<vmem>>, vector<8x128xf32>,
    return
  }
  func.func @transform_0(%arg0: i32) -> (i32, i32) {
    %c0_i32 = arith.constant 0 : i32
    %c0_i32_0 = arith.constant 0 : i32
    return %arg0, %c0_i32 : i32, i32
  }
  func.func @transform_1(%arg0: i32) -> (i32, i32) {
    %c0_i32 = arith.constant 0 : i32
    %c0_i32_0 = arith.constant 0 : i32
    %c0_i32_1 = arith.constant 0 : i32
    return %c0_i32, %c0_i32_0 : i32, i32
  }
  func.func @transform_2(%arg0: i32) -> (i32, i32) {
    %c0_i32 = arith.constant 0 : i32
    %c0_i32_0 = arith.constant 0 : i32
    return %arg0, %c0_i32 : i32, i32
  }
}

</mosaic_0001>

<bundles_post_ra>
// kernel: tpu_custom_call.1
= control target key start
LH: loop header
LB: loop body
LE: loop exit
PB: predicated region body
PF: predicated region fallthrough
CT: control target
= control target key end

     0   :  { %7 = vsyncpa [#allocation3], 0  ;;  %s132_s0 = inlined_call_operand.hbm [shape: f32[8,128], index: 0, kind: input, shape index: {}]   ;;  %s133_s1 = inlined_call_operand.vmem [shape: f32[1,128], index: 1, kind: input, shape index: {}]   ;;  %s134_s2 = inlined_call_operand.hbm [shape: f32[8,128], index: 2, kind: output, shape index: {}]  }
   0x1   :  { %8 = vsyncpa [#allocation4], 0  ;;  %s106_s9 = smov [#allocation2]  }
   0x2   :  { %s15_s10 = sshll.u32 %s106_s9, 4  ;;  %s16_s10 = int_to_ptr.vmem [resolvable:$true] %s15_s10 }
   0x3   :  { %s70_s11 = scalar_lea.vmem %s16_s10, 128  ;;  %p75_p1 = scmp.lt.s32.totalorder %s16_s10, %s16_s10 }
   0x4   :  { %p71_p0 = scmp.ne.s32.totalorder %s16_s10, %s70_s11  ;;  %p76_p2 = scmp.lt.s32.totalorder %s70_s11, %s70_s11 }
   0x6   :  { %p77_p3 = por %p76_p2, %p75_p1 }
   0x8   :  { %p78_p4 = pnand %p77_p3, %p71_p0 }
   0xa   :  { %81 = shalt.err (!%p78_p4)
}
   0xb   :  { %18 = dma.hbm_to_vmem [thread:$0]  %s132_s0, 128, %s16_s10, [#allocation3]  }
   0xc   :  { %102 = dma.done.wait [#allocation3], 128  }
   0xd   :  { %103 = vsyncadd [#allocation3], 4294967168  ;;  %v24_v0 = vld [vmem:[#allocation2] sm:$0xff]  ;;  %s107_s16 = smov [#allocation5]  }
   0xe   :  { %v25_v1 = vmul.f32 %v24_v0, %v24_v0  ;;  %v57_v6 = vld [vmem:[%s133_s1] ss:$0 sm:$0xff]  ;;  %s48_s17 = sshll.u32 %s107_s16, 4  ;;  %s49_s17 = int_to_ptr.vmem [resolvable:$true] %s48_s17 }
   0xf   :  { %s82_s0 = scalar_lea.vmem %s49_s17, 128  ;;  %p87_p6 = scmp.lt.s32.totalorder %s49_s17, %s49_s17 }
  0x10   :  { %26 = vadd.xlane.f32.xlu0 %v25_v1  ;;  %p83_p5 = scmp.ne.s32.totalorder %s49_s17, %s82_s0  ;;  %p88_p7 = scmp.lt.s32.totalorder %s82_s0, %s82_s0 }
  0x12   :  { %p89_p8 = por %p88_p7, %p87_p6 }
  0x14   :  { %p90_p9 = pnand %p89_p8, %p83_p5 }
  0x99   :  { %v27_v2 = vpop.xlane.xlu0 %26 }
  0x9a   :  { %v29_v3 = vmul.f32 0.0078125, %v27_v2 }
  0x9c   :  { %v30_v4 = vadd.f32 1e-06, %v29_v3 }
  0x9e   :  { %60 = vrsqrt.f32 %v30_v4 }
  0xab   :  { %v61_v5 = vpop.eup %60 }
  0xac   :  { %v32_v7 = vmul.f32 %v61_v5, %v24_v0 }
  0xae   :  { %v40_v8 = vmul.f32 %v57_v6, %v32_v7 }
  0xb0   :  { %41 = vst [vmem:[#allocation5] sm:$0xff] %v40_v8 }
  0xb1   :  { %93 = shalt.err (!%p90_p9)
}
  0xb2   :  { %51 = dma.vmem_to_hbm [thread:$0]  %s49_s17, 128, %s134_s2, [#allocation4]  }
  0xb3   :  { %104 = dma.done.wait [#allocation4], 128  }
  0xb4   :  { %105 = vsyncadd [#allocation4], 4294967168 }
  0xb5   :  { %55 = vsyncpa [#allocation3], 1 }
  0xb6   :  { %56 = vsyncpa [#allocation4], 1 }

</bundles_post_ra>
